<compile_context>
chip_gen: v6e
topology: v6e:2x2x1
jax: 0.10.0
libtpu: 0.0.40
codegen_flags: <defaults>
</compile_context>

<pallas_src>
import math

import jax
import jax.numpy as jnp
from jax.experimental import pallas as pl
from jax.experimental.pallas import tpu as pltpu


HEAD_PAD = 128  # lane-dense padded width for the fused classification heads


# ----------------------------------------------------------------------------
# Fused kernel: encoder layer + MeanPooling + 4 heads
# ----------------------------------------------------------------------------
def _layer_norm(x, g, b, eps=1e-12):
    # f32 statistics (eps=1e-12 as in BERT)
    mu = jnp.mean(x, axis=-1, keepdims=True)
    var = jnp.mean((x - mu) ** 2, axis=-1, keepdims=True)
    return (x - mu) * jax.lax.rsqrt(var + eps) * g + b


def neural_clf_kernel(emb_ref, bias_ref, wqkvo_ref, vecs_ref,
                      w1_ref, bf1_ref, w2_ref, wh_ref, bh_ref, out_ref):
    x3 = emb_ref[...]                         # (bt, S, H) f32
    bt, s, h = x3.shape
    x = x3.reshape(bt * s, h)                 # fill MXU M-dim with bt*S rows
    xb = x.astype(jnp.bfloat16)

    abias = bias_ref[...]                     # (bt, 1, S) f32 additive attn bias

    vecs = vecs_ref[...]                      # (9, H) f32 packed bias/LN slab
    bq, bk, bv, bo = vecs[0:1], vecs[1:2], vecs[2:3], vecs[3:4]
    g1, be1 = vecs[4:5], vecs[5:6]
    b2 = vecs[6:7]
    g2, be2 = vecs[7:8], vecs[8:9]

    wq = wqkvo_ref[0]                         # (H, H) bf16 slices of the slab
    wk = wqkvo_ref[1]
    wv = wqkvo_ref[2]
    wo = wqkvo_ref[3]

    # --- self-attention (bf16 MXU operands, f32 accumulation) ----------------
    q = jnp.dot(xb, wq, preferred_element_type=jnp.float32) + bq
    k = jnp.dot(xb, wk, preferred_element_type=jnp.float32) + bk
    v = jnp.dot(xb, wv, preferred_element_type=jnp.float32) + bv

    q3 = q.reshape(bt, s, h).astype(jnp.bfloat16)
    k3 = k.reshape(bt, s, h).astype(jnp.bfloat16)
    v3 = v.reshape(bt, s, h).astype(jnp.bfloat16)

    # contract last dims of q / k directly (no explicit transpose of k)
    scores = jnp.einsum("bqd,bkd->bqk", q3, k3,
                        preferred_element_type=jnp.float32)
    scores = scores * (1.0 / math.sqrt(h)) + abias     # f32 (bt,S,S)+(bt,1,S)
    scores = scores - jnp.max(scores, axis=-1, keepdims=True)
    p = jnp.exp(scores)                                 # f32 exp
    attn = p * pl.reciprocal(jnp.sum(p, axis=-1, keepdims=True), approx=True)

    ctx = jnp.einsum("bqk,bkd->bqd", attn.astype(jnp.bfloat16), v3,
                     preferred_element_type=jnp.float32)
    attn_out = jnp.dot(ctx.reshape(bt * s, h).astype(jnp.bfloat16), wo,
                       preferred_element_type=jnp.float32) + bo

    h1 = _layer_norm(x + attn_out, g1, be1)             # f32 residual + LN

    # --- FFN ------------------------------------------------------------------
    ff = jnp.dot(h1.astype(jnp.bfloat16), w1_ref[...],
                 preferred_element_type=jnp.float32) + bf1_ref[...]
    ff = jax.nn.gelu(ff)                                 # f32
    ff = jnp.dot(ff.astype(jnp.bfloat16), w2_ref[...],
                 preferred_element_type=jnp.float32) + b2
    h2 = _layer_norm(h1 + ff, g2, be2)                   # (bt*S, H) f32

    # --- MeanPooling + fused classification heads ------------------------------
    # Pooling mask derived from the lane-dense additive bias (0 <=> real token),
    # pooled sum on the MXU; pooling divide kept exact (no approx reciprocal).
    m = (abias == 0.0).astype(jnp.float32)               # (bt, 1, S)
    h2_3 = h2.reshape(bt, s, h).astype(jnp.bfloat16)
    sum_emb = jnp.einsum("bqs,bsh->bqh", m.astype(jnp.bfloat16), h2_3,
                         preferred_element_type=jnp.float32)[:, 0, :]  # (bt, H)
    sum_mask = jnp.maximum(jnp.sum(m, axis=-1), 1e-9)     # (bt, 1)
    mean = sum_emb / sum_mask                              # (bt, H) f32

    # MultiSampleDropout @ eval == plain Linear; the four heads are fused into
    # one lane-dense (H, 128) matmul (zero-padded beyond the 12 real classes).
    out_ref[...] = jnp.dot(mean.astype(jnp.bfloat16), wh_ref[...],
                           preferred_element_type=jnp.float32) + bh_ref[...]


# ----------------------------------------------------------------------------
# Wrapper
# ----------------------------------------------------------------------------
def _pick_batch_block(B, S, rows_target=512):
    # bb*S <= rows_target bounds the live FFN/gelu intermediate; bb must be a
    # multiple of 8 (or equal B) for the (8,128) rule on the (bb,128) output
    # block; prefer >= 2 grid blocks so v7x's second TensorCore gets work.
    max_rows = max(1, rows_target // max(S, 1))
    cands = [d for d in range(8, B + 1, 8) if B % d == 0 and d <= max_rows]
    two_blk = [d for d in cands if d <= B // 2]
    if two_blk:
        return max(two_blk)
    if cands:
        return max(cands)
    return B


def _vmem_limit_bytes(bb, S, H, F):
    bf16, f32 = 2, 4
    weights = (4 * H * H + H * F + F * H + H * HEAD_PAD) * bf16   # single-buffered
    slabs = (9 * H + F + HEAD_PAD) * f32
    streamed = 2 * (bb * S * H + bb * S + bb * HEAD_PAD) * f32    # double-buffered I/O
    acts = (bb * S * (4 * H + F) + bb * S * S) * f32              # rough live intermediates
    need = weights + slabs + streamed + acts
    return int(min(64 << 20, max(2 * need, 16 << 20)))


def neural_clf_pallas(p, emb, attn_masks):
    B, S, H = emb.shape
    F = p["w1"].shape[1]
    sizes = (p["wt"].shape[1], p["wp"].shape[1],
             p["wn"].shape[1], p["wc"].shape[1])
    c_tot = sum(sizes)

    # Fuse + pad the four head weights/biases into one lane-dense slab.
    wh = jnp.pad(jnp.concatenate([p["wt"], p["wp"], p["wn"], p["wc"]], axis=1),
                 ((0, 0), (0, HEAD_PAD - c_tot))).astype(jnp.bfloat16)
    bh = jnp.pad(jnp.concatenate([p["bt"], p["bp"], p["bn"], p["bc"]], axis=1),
                 ((0, 0), (0, HEAD_PAD - c_tot)))                 # f32

    # Stack the 4 attention weight matrices and the 9 (1,H) bias / LN vectors.
    wqkvo = jnp.stack([p["wq"], p["wk"], p["wv"], p["wo"]]).astype(jnp.bfloat16)
    vecs = jnp.concatenate([p["bq"], p["bk"], p["bv"], p["bo"],
                            p["ln1_g"], p["ln1_b"], p["b2"],
                            p["ln2_g"], p["ln2_b"]], axis=0)      # (9, H) f32
    w1 = p["w1"].astype(jnp.bfloat16)
    w2 = p["w2"].astype(jnp.bfloat16)
    bf1 = p["b1"]                                                  # (1, F) f32

    mask = attn_masks.astype(jnp.float32)
    neg_bias = (1.0 - mask)[:, None, :] * (-1e9)      # (B, 1, S) additive attn bias (f32)

    bb = _pick_batch_block(B, S)
    grid = (B // bb,)

    def const(shape):
        nd = len(shape)
        # Same block every grid step -> single-buffer to halve its VMEM.
        return pl.BlockSpec(shape, lambda *_: (0,) * nd,
                            pipeline_mode=pl.Buffered(1))

    in_specs = [
        pl.BlockSpec((bb, S, H), lambda b: (b, 0, 0)),   # embeddings
        pl.BlockSpec((bb, 1, S), lambda b: (b, 0, 0)),   # additive attention bias
        const((4, H, H)),                                # wq|wk|wv|wo (bf16)
        const((9, H)),                                   # bq|bk|bv|bo|ln1|b2|ln2 (f32)
        const((H, F)),                                   # ffn w1 (bf16)
        const((1, F)),                                   # ffn b1 (f32)
        const((F, H)),                                   # ffn w2 (bf16)
        const((H, HEAD_PAD)),                            # fused heads W (bf16)
        const((1, HEAD_PAD)),                            # fused heads b (f32)
    ]

    logits = pl.pallas_call(
        neural_clf_kernel,
        out_shape=jax.ShapeDtypeStruct((B, HEAD_PAD), jnp.float32),
        grid=grid,
        in_specs=in_specs,
        out_specs=pl.BlockSpec((bb, HEAD_PAD), lambda b: (b, 0)),
        compiler_params=pltpu.CompilerParams(
            dimension_semantics=("parallel",),
            vmem_limit_bytes=_vmem_limit_bytes(bb, S, H, F)),
    )(emb, neg_bias, wqkvo, vecs, w1, bf1, w2, wh, bh)

    outs, off = [], 0
    for c in sizes:
        outs.append(logits[:, off:off + c])
        off += c
    return tuple(outs)                                  # (B,4),(B,3),(B,3),(B,2)


def neural_clf_forward(params, input_ids, attn_masks):
    # Glue: embedding gather + positional embedding (plain JAX).
    emb = params["word_emb"][input_ids] + params["pos_emb"][None, :, :]
    return neural_clf_pallas(params, emb, attn_masks)


# ----------------------------------------------------------------------------
# Deterministic parameter init + pure-JAX reference + run
# ----------------------------------------------------------------------------
def init_params(key, vocab, S, H, F, type_c=4, pol_c=3, tense_c=3, cert_c=2):
    std = 0.02  # config.initializer_range
    ks = jax.random.split(key, 16)
    n = lambda k, s: (std * jax.random.normal(k, s)).astype(jnp.float32)
    z = lambda s: jnp.zeros(s, jnp.float32)
    o = lambda s: jnp.ones(s, jnp.float32)
    return {
        "word_emb": n(ks[0], (vocab, H)),
        "pos_emb":  n(ks[1], (S, H)),
        "wq": n(ks[2], (H, H)), "bq": z((1, H)),
        "wk": n(ks[3], (H, H)), "bk": z((1, H)),
        "wv": n(ks[4], (H, H)), "bv": z((1, H)),
        "wo": n(ks[5], (H, H)), "bo": z((1, H)),
        "ln1_g": o((1, H)), "ln1_b": z((1, H)),
        "w1": n(ks[6], (H, F)), "b1": z((1, F)),
        "w2": n(ks[7], (F, H)), "b2": z((1, H)),
        "ln2_g": o((1, H)), "ln2_b": z((1, H)),
        # classifier heads (_init_weights: normal(0, initializer_range), bias=0)
        "wt": n(ks[8], (H, type_c)),   "bt": z((1, type_c)),
        "wp": n(ks[9], (H, pol_c)),    "bp": z((1, pol_c)),
        "wn": n(ks[10], (H, tense_c)), "bn": z((1, tense_c)),
        "wc": n(ks[11], (H, cert_c)),  "bc": z((1, cert_c)),
    }


def _reference(params, input_ids, attn_masks):
    emb = params["word_emb"][input_ids] + params["pos_emb"][None]
    m = attn_masks.astype(jnp.float32)[:, :, None]
    H = emb.shape[-1]

    def ln(x, g, b, eps=1e-12):
        mu = x.mean(-1, keepdims=True)
        var = ((x - mu) ** 2).mean(-1, keepdims=True)
        return (x - mu) / jnp.sqrt(var + eps) * g + b

    q = emb @ params["wq"] + params["bq"]
    k = emb @ params["wk"] + params["bk"]
    v = emb @ params["wv"] + params["bv"]
    s = jnp.einsum("bqd,bkd->bqk", q, k) / math.sqrt(H)
    s = s + (1.0 - m.transpose(0, 2, 1)) * (-1e9)
    a = jax.nn.softmax(s, axis=-1)
    ao = jnp.einsum("bqk,bkd->bqd", a, v) @ params["wo"] + params["bo"]
    h1 = ln(emb + ao, params["ln1_g"], params["ln1_b"])
    ff = jax.nn.gelu(h1 @ params["w1"] + params["b1"]) @ params["w2"] + params["b2"]
    h2 = ln(h1 + ff, params["ln2_g"], params["ln2_b"])

    mean = (h2 * m).sum(1) / jnp.maximum(m.sum(1), 1e-9)
    return (mean @ params["wt"] + params["bt"],
            mean @ params["wp"] + params["bp"],
            mean @ params["wn"] + params["bn"],
            mean @ params["wc"] + params["bc"])


if __name__ == "__main__":
    B, S, H, F, V = 2, 8, 32, 64, 100

    key = jax.random.PRNGKey(0)
    kp, kid = jax.random.split(key)
    params = init_params(kp, V, S, H, F)

    input_ids = jax.random.randint(kid, (B, S), 0, V, dtype=jnp.int32)
    attn_masks = jnp.array([[1, 1, 1, 1, 1, 1, 0, 0],
                            [1, 1, 1, 1, 0, 0, 0, 0]], dtype=jnp.float32)

    outs = jax.block_until_ready(neural_clf_forward(params, input_ids, attn_masks))
    refs = _reference(params, input_ids, attn_masks)

    for o, r in zip(outs, refs):
        assert o.shape == r.shape
        # tolerance covers bf16 MXU operands (f32 accumulation) and the approx
        # reciprocal in softmax vs. the pure-f32 reference
        assert float(jnp.max(jnp.abs(o - r))) < 1.5e-2, "mismatch vs JAX reference"

    print("KERNEL_OK")
</pallas_src>

<mosaic_0001>
module attributes {stable_mosaic.version = 11 : i64} {
  func.func @neural_clf_kernel(%arg0: i32, %arg1: memref<2x8x32xf32, #tpu.memory_space<vmem>>, %arg2: memref<2x1x8xf32, #tpu.memory_space<vmem>>, %arg3: memref<4x32x32xbf16, #tpu.memory_space<vmem>>, %arg4: memref<9x32xf32, #tpu.memory_space<vmem>>, %arg5: memref<32x64xbf16, #tpu.memory_space<vmem>>, %arg6: memref<1x64xf32, #tpu.memory_space<vmem>>, %arg7: memref<64x32xbf16, #tpu.memory_space<vmem>>, %arg8: memref<32x128xbf16, #tpu.memory_space<vmem>>, %arg9: memref<1x128xf32, #tpu.memory_space<vmem>>, %arg10: memref<2x128xf32, #tpu.memory_space<vmem>>) attributes {dimension_semantics = [#tpu.dimension_semantics<parallel>], iteration_bounds = array<i64: 1>, scalar_prefetch = 0 : i64, scratch_operands = 0 : i64, tpu.core_type = #tpu.core_type<tc>, window_params = [{transform_indices = @transform_0, window_bounds = array<i64: 2, 8, 32>}, {transform_indices = @transform_1, window_bounds = array<i64: 2, 1, 8>}, {pipeline_mode = #tpu.pipeline_mode<synchronous>, transform_indices = @transform_2, window_bounds = array<i64: 4, 32, 32>}, {pipeline_mode = #tpu.pipeline_mode<synchronous>, transform_indices = @transform_3, window_bounds = array<i64: 9, 32>}, {pipeline_mode = #tpu.pipeline_mode<synchronous>, transform_indices = @transform_4, window_bounds = array<i64: 32, 64>}, {pipeline_mode = #tpu.pipeline_mode<synchronous>, transform_indices = @transform_5, window_bounds = array<i64: 1, 64>}, {pipeline_mode = #tpu.pipeline_mode<synchronous>, transform_indices = @transform_6, window_bounds = array<i64: 64, 32>}, {pipeline_mode = #tpu.pipeline_mode<synchronous>, transform_indices = @transform_7, window_bounds = array<i64: 32, 128>}, {pipeline_mode = #tpu.pipeline_mode<synchronous>, transform_indices = @transform_8, window_bounds = array<i64: 1, 128>}, {transform_indices = @transform_9, window_bounds = array<i64: 2, 128>}]} {
    %c0 = arith.constant 0 : index
    %c0_0 = arith.constant 0 : index
    %c0_1 = arith.constant 0 : index
    %0 = vector.load %arg1[%c0, %c0_0, %c0_1] : memref<2x8x32xf32, #tpu.memory_space<vmem>>, vector<2x8x32xf32>
    %1 = vector.shape_cast %0 : vector<2x8x32xf32> to vector<16x32xf32>
    %2 = arith.truncf %1 : vector<16x32xf32> to vector<16x32xbf16>
    %c0_2 = arith.constant 0 : index
    %c0_3 = arith.constant 0 : index
    %c0_4 = arith.constant 0 : index
    %3 = vector.load %arg2[%c0_2, %c0_3, %c0_4] : memref<2x1x8xf32, #tpu.memory_space<vmem>>, vector<2x1x8xf32>
    %c0_5 = arith.constant 0 : index
    %c0_6 = arith.constant 0 : index
    %4 = vector.load %arg4[%c0_5, %c0_6] : memref<9x32xf32, #tpu.memory_space<vmem>>, vector<9x32xf32>
    %5 = vector.extract_strided_slice %4 {offsets = [0, 0], sizes = [1, 32], strides = [1, 1]} : vector<9x32xf32> to vector<1x32xf32>
    %6 = vector.extract_strided_slice %4 {offsets = [1, 0], sizes = [1, 32], strides = [1, 1]} : vector<9x32xf32> to vector<1x32xf32>
    %7 = vector.extract_strided_slice %4 {offsets = [2, 0], sizes = [1, 32], strides = [1, 1]} : vector<9x32xf32> to vector<1x32xf32>
    %8 = vector.extract_strided_slice %4 {offsets = [3, 0], sizes = [1, 32], strides = [1, 1]} : vector<9x32xf32> to vector<1x32xf32>
    %9 = vector.extract_strided_slice %4 {offsets = [4, 0], sizes = [1, 32], strides = [1, 1]} : vector<9x32xf32> to vector<1x32xf32>
    %10 = vector.extract_strided_slice %4 {offsets = [5, 0], sizes = [1, 32], strides = [1, 1]} : vector<9x32xf32> to vector<1x32xf32>
    %11 = vector.extract_strided_slice %4 {offsets = [6, 0], sizes = [1, 32], strides = [1, 1]} : vector<9x32xf32> to vector<1x32xf32>
    %12 = vector.extract_strided_slice %4 {offsets = [7, 0], sizes = [1, 32], strides = [1, 1]} : vector<9x32xf32> to vector<1x32xf32>
    %13 = vector.extract_strided_slice %4 {offsets = [8, 0], sizes = [1, 32], strides = [1, 1]} : vector<9x32xf32> to vector<1x32xf32>
    %c0_7 = arith.constant 0 : index
    %c0_8 = arith.constant 0 : index
    %c0_9 = arith.constant 0 : index
    %14 = vector.load %arg3[%c0_7, %c0_8, %c0_9] : memref<4x32x32xbf16, #tpu.memory_space<vmem>>, vector<1x32x32xbf16>
    %15 = vector.shape_cast %14 : vector<1x32x32xbf16> to vector<32x32xbf16>
    %c1 = arith.constant 1 : index
    %c0_10 = arith.constant 0 : index
    %c0_11 = arith.constant 0 : index
    %16 = vector.load %arg3[%c1, %c0_10, %c0_11] : memref<4x32x32xbf16, #tpu.memory_space<vmem>>, vector<1x32x32xbf16>
    %17 = vector.shape_cast %16 : vector<1x32x32xbf16> to vector<32x32xbf16>
    %c2 = arith.constant 2 : index
    %c0_12 = arith.constant 0 : index
    %c0_13 = arith.constant 0 : index
    %18 = vector.load %arg3[%c2, %c0_12, %c0_13] : memref<4x32x32xbf16, #tpu.memory_space<vmem>>, vector<1x32x32xbf16>
    %19 = vector.shape_cast %18 : vector<1x32x32xbf16> to vector<32x32xbf16>
    %c3 = arith.constant 3 : index
    %c0_14 = arith.constant 0 : index
    %c0_15 = arith.constant 0 : index
    %20 = vector.load %arg3[%c3, %c0_14, %c0_15] : memref<4x32x32xbf16, #tpu.memory_space<vmem>>, vector<1x32x32xbf16>
    %21 = vector.shape_cast %20 : vector<1x32x32xbf16> to vector<32x32xbf16>
    %cst = arith.constant dense<0.000000e+00> : vector<16x32xf32>
    %22 = tpu.matmul %2, %15, %cst {dimension_numbers = #tpu.dot_dimension_numbers<[1], [0], [0], [1], [0, 0, 1, 1], [], []>} : vector<16x32xbf16>, vector<32x32xbf16>, vector<16x32xf32> -> vector<16x32xf32>
    %23 = vector.broadcast %5 : vector<1x32xf32> to vector<16x32xf32>
    %24 = arith.addf %22, %23 : vector<16x32xf32>
    %cst_16 = arith.constant dense<0.000000e+00> : vector<16x32xf32>
    %25 = tpu.matmul %2, %17, %cst_16 {dimension_numbers = #tpu.dot_dimension_numbers<[1], [0], [0], [1], [0, 0, 1, 1], [], []>} : vector<16x32xbf16>, vector<32x32xbf16>, vector<16x32xf32> -> vector<16x32xf32>
    %26 = vector.broadcast %6 : vector<1x32xf32> to vector<16x32xf32>
    %27 = arith.addf %25, %26 : vector<16x32xf32>
    %cst_17 = arith.constant dense<0.000000e+00> : vector<16x32xf32>
    %28 = tpu.matmul %2, %19, %cst_17 {dimension_numbers = #tpu.dot_dimension_numbers<[1], [0], [0], [1], [0, 0, 1, 1], [], []>} : vector<16x32xbf16>, vector<32x32xbf16>, vector<16x32xf32> -> vector<16x32xf32>
    %29 = vector.broadcast %7 : vector<1x32xf32> to vector<16x32xf32>
    %30 = arith.addf %28, %29 : vector<16x32xf32>
    %31 = vector.shape_cast %24 : vector<16x32xf32> to vector<2x8x32xf32>
    %32 = arith.truncf %31 : vector<2x8x32xf32> to vector<2x8x32xbf16>
    %33 = vector.shape_cast %27 : vector<16x32xf32> to vector<2x8x32xf32>
    %34 = arith.truncf %33 : vector<2x8x32xf32> to vector<2x8x32xbf16>
    %35 = vector.shape_cast %30 : vector<16x32xf32> to vector<2x8x32xf32>
    %36 = arith.truncf %35 : vector<2x8x32xf32> to vector<2x8x32xbf16>
    "tpu.trace_start"() <{level = 10 : i32, message = "bqd,bkd->bqk"}> : () -> ()
    %cst_18 = arith.constant dense<0.000000e+00> : vector<2x8x8xf32>
    %37 = tpu.matmul %32, %34, %cst_18 {dimension_numbers = #tpu.dot_dimension_numbers<[2], [2], [1], [1], [0, 0, 0, 1, 1, 1], [0], [0]>} : vector<2x8x32xbf16>, vector<2x8x32xbf16>, vector<2x8x8xf32> -> vector<2x8x8xf32>
    "tpu.trace_stop"() : () -> ()
    %cst_19 = arith.constant 0.176776692 : f32
    %38 = vector.broadcast %cst_19 : f32 to vector<2x8x8xf32>
    %39 = arith.mulf %37, %38 : vector<2x8x8xf32>
    %40 = vector.broadcast %3 : vector<2x1x8xf32> to vector<2x8x8xf32>
    %41 = arith.addf %39, %40 : vector<2x8x8xf32>
    %cst_20 = arith.constant dense<0xFF800000> : vector<2x8xf32>
    %42 = vector.multi_reduction <maximumf>, %41, %cst_20 [2] : vector<2x8x8xf32> to vector<2x8xf32>
    %43 = vector.shape_cast %42 : vector<2x8xf32> to vector<2x8x1xf32>
    %44 = vector.broadcast %43 : vector<2x8x1xf32> to vector<2x8x8xf32>
    %45 = arith.subf %41, %44 : vector<2x8x8xf32>
    %46 = math.exp %45 : vector<2x8x8xf32>
    %cst_21 = arith.constant dense<0.000000e+00> : vector<2x8xf32>
    %47 = vector.multi_reduction <add>, %46, %cst_21 [2] : vector<2x8x8xf32> to vector<2x8xf32>
    %48 = vector.shape_cast %47 : vector<2x8xf32> to vector<2x8x1xf32>
    %49 = tpu.reciprocal %48 {approx = true} : vector<2x8x1xf32> -> vector<2x8x1xf32>
    %50 = vector.broadcast %49 : vector<2x8x1xf32> to vector<2x8x8xf32>
    %51 = arith.mulf %46, %50 : vector<2x8x8xf32>
    %52 = arith.truncf %51 : vector<2x8x8xf32> to vector<2x8x8xbf16>
    "tpu.trace_start"() <{level = 10 : i32, message = "bqk,bkd->bqd"}> : () -> ()
    %cst_22 = arith.constant dense<0.000000e+00> : vector<2x8x32xf32>
    %53 = tpu.matmul %52, %36, %cst_22 {dimension_numbers = #tpu.dot_dimension_numbers<[2], [1], [1], [2], [0, 0, 0, 1, 1, 2], [0], [0]>} : vector<2x8x8xbf16>, vector<2x8x32xbf16>, vector<2x8x32xf32> -> vector<2x8x32xf32>
    "tpu.trace_stop"() : () -> ()
    %54 = vector.shape_cast %53 : vector<2x8x32xf32> to vector<16x32xf32>
    %55 = arith.truncf %54 : vector<16x32xf32> to vector<16x32xbf16>
    %cst_23 = arith.constant dense<0.000000e+00> : vector<16x32xf32>
    %56 = tpu.matmul %55, %21, %cst_23 {dimension_numbers = #tpu.dot_dimension_numbers<[1], [0], [0], [1], [0, 0, 1, 1], [], []>} : vector<16x32xbf16>, vector<32x32xbf16>, vector<16x32xf32> -> vector<16x32xf32>
    %57 = vector.broadcast %8 : vector<1x32xf32> to vector<16x32xf32>
    %58 = arith.addf %56, %57 : vector<16x32xf32>
    %59 = arith.addf %1, %58 : vector<16x32xf32>
    %cst_24 = arith.constant dense<0.000000e+00> : vector<16xf32>
    %60 = vector.multi_reduction <add>, %59, %cst_24 [1] : vector<16x32xf32> to vector<16xf32>
    %61 = vector.shape_cast %60 : vector<16xf32> to vector<16x1xf32>
    %cst_25 = arith.constant 3.200000e+01 : f32
    %62 = vector.broadcast %cst_25 : f32 to vector<16x1xf32>
    %63 = arith.divf %61, %62 : vector<16x1xf32>
    %64 = vector.broadcast %63 : vector<16x1xf32> to vector<16x32xf32>
    %65 = arith.subf %59, %64 : vector<16x32xf32>
    %66 = arith.mulf %65, %65 : vector<16x32xf32>
    %cst_26 = arith.constant dense<0.000000e+00> : vector<16xf32>
    %67 = vector.multi_reduction <add>, %66, %cst_26 [1] : vector<16x32xf32> to vector<16xf32>
    %68 = vector.shape_cast %67 : vector<16xf32> to vector<16x1xf32>
    %cst_27 = arith.constant 3.200000e+01 : f32
    %69 = vector.broadcast %cst_27 : f32 to vector<16x1xf32>
    %70 = arith.divf %68, %69 : vector<16x1xf32>
    %71 = vector.broadcast %63 : vector<16x1xf32> to vector<16x32xf32>
    %72 = arith.subf %59, %71 : vector<16x32xf32>
    %cst_28 = arith.constant 9.99999996E-13 : f32
    %73 = vector.broadcast %cst_28 : f32 to vector<16x1xf32>
    %74 = arith.addf %70, %73 : vector<16x1xf32>
    %75 = math.rsqrt %74 : vector<16x1xf32>
    %76 = vector.broadcast %75 : vector<16x1xf32> to vector<16x32xf32>
    %77 = arith.mulf %72, %76 : vector<16x32xf32>
    %78 = vector.broadcast %9 : vector<1x32xf32> to vector<16x32xf32>
    %79 = arith.mulf %77, %78 : vector<16x32xf32>
    %80 = vector.broadcast %10 : vector<1x32xf32> to vector<16x32xf32>
    %81 = arith.addf %79, %80 : vector<16x32xf32>
    %82 = arith.truncf %81 : vector<16x32xf32> to vector<16x32xbf16>
    %c0_29 = arith.constant 0 : index
    %c0_30 = arith.constant 0 : index
    %83 = vector.load %arg5[%c0_29, %c0_30] : memref<32x64xbf16, #tpu.memory_space<vmem>>, vector<32x64xbf16>
    %cst_31 = arith.constant dense<0.000000e+00> : vector<16x64xf32>
    %84 = tpu.matmul %82, %83, %cst_31 {dimension_numbers = #tpu.dot_dimension_numbers<[1], [0], [0], [1], [0, 0, 1, 1], [], []>} : vector<16x32xbf16>, vector<32x64xbf16>, vector<16x64xf32> -> vector<16x64xf32>
    %c0_32 = arith.constant 0 : index
    %c0_33 = arith.constant 0 : index
    %85 = vector.load %arg6[%c0_32, %c0_33] : memref<1x64xf32, #tpu.memory_space<vmem>>, vector<1x64xf32>
    %86 = vector.broadcast %85 : vector<1x64xf32> to vector<16x64xf32>
    %87 = arith.addf %84, %86 : vector<16x64xf32>
    %88 = arith.mulf %87, %87 : vector<16x64xf32>
    %89 = arith.mulf %87, %88 : vector<16x64xf32>
    %cst_34 = arith.constant 4.471500e-02 : f32
    %90 = vector.broadcast %cst_34 : f32 to vector<16x64xf32>
    %91 = arith.mulf %90, %89 : vector<16x64xf32>
    %92 = arith.addf %87, %91 : vector<16x64xf32>
    %cst_35 = arith.constant 0.797884583 : f32
    %93 = vector.broadcast %cst_35 : f32 to vector<16x64xf32>
    %94 = arith.mulf %93, %92 : vector<16x64xf32>
    %95 = math.tanh %94 : vector<16x64xf32>
    %cst_36 = arith.constant 1.000000e+00 : f32
    %96 = vector.broadcast %cst_36 : f32 to vector<16x64xf32>
    %97 = arith.addf %96, %95 : vector<16x64xf32>
    %cst_37 = arith.constant 5.000000e-01 : f32
    %98 = vector.broadcast %cst_37 : f32 to vector<16x64xf32>
    %99 = arith.mulf %98, %97 : vector<16x64xf32>
    %100 = arith.mulf %87, %99 : vector<16x64xf32>
    %101 = arith.truncf %100 : vector<16x64xf32> to vector<16x64xbf16>
    %c0_38 = arith.constant 0 : index
    %c0_39 = arith.constant 0 : index
    %102 = vector.load %arg7[%c0_38, %c0_39] : memref<64x32xbf16, #tpu.memory_space<vmem>>, vector<64x32xbf16>
    %cst_40 = arith.constant dense<0.000000e+00> : vector<16x32xf32>
    %103 = tpu.matmul %101, %102, %cst_40 {dimension_numbers = #tpu.dot_dimension_numbers<[1], [0], [0], [1], [0, 0, 1, 1], [], []>} : vector<16x64xbf16>, vector<64x32xbf16>, vector<16x32xf32> -> vector<16x32xf32>
    %104 = vector.broadcast %11 : vector<1x32xf32> to vector<16x32xf32>
    %105 = arith.addf %103, %104 : vector<16x32xf32>
    %106 = arith.addf %81, %105 : vector<16x32xf32>
    %cst_41 = arith.constant dense<0.000000e+00> : vector<16xf32>
    %107 = vector.multi_reduction <add>, %106, %cst_41 [1] : vector<16x32xf32> to vector<16xf32>
    %108 = vector.shape_cast %107 : vector<16xf32> to vector<16x1xf32>
    %cst_42 = arith.constant 3.200000e+01 : f32
    %109 = vector.broadcast %cst_42 : f32 to vector<16x1xf32>
    %110 = arith.divf %108, %109 : vector<16x1xf32>
    %111 = vector.broadcast %110 : vector<16x1xf32> to vector<16x32xf32>
    %112 = arith.subf %106, %111 : vector<16x32xf32>
    %113 = arith.mulf %112, %112 : vector<16x32xf32>
    %cst_43 = arith.constant dense<0.000000e+00> : vector<16xf32>
    %114 = vector.multi_reduction <add>, %113, %cst_43 [1] : vector<16x32xf32> to vector<16xf32>
    %115 = vector.shape_cast %114 : vector<16xf32> to vector<16x1xf32>
    %cst_44 = arith.constant 3.200000e+01 : f32
    %116 = vector.broadcast %cst_44 : f32 to vector<16x1xf32>
    %117 = arith.divf %115, %116 : vector<16x1xf32>
    %118 = vector.broadcast %110 : vector<16x1xf32> to vector<16x32xf32>
    %119 = arith.subf %106, %118 : vector<16x32xf32>
    %cst_45 = arith.constant 9.99999996E-13 : f32
    %120 = vector.broadcast %cst_45 : f32 to vector<16x1xf32>
    %121 = arith.addf %117, %120 : vector<16x1xf32>
    %122 = math.rsqrt %121 : vector<16x1xf32>
    %123 = vector.broadcast %122 : vector<16x1xf32> to vector<16x32xf32>
    %124 = arith.mulf %119, %123 : vector<16x32xf32>
    %125 = vector.broadcast %12 : vector<1x32xf32> to vector<16x32xf32>
    %126 = arith.mulf %124, %125 : vector<16x32xf32>
    %127 = vector.broadcast %13 : vector<1x32xf32> to vector<16x32xf32>
    %128 = arith.addf %126, %127 : vector<16x32xf32>
    %cst_46 = arith.constant 0.000000e+00 : f32
    %129 = vector.broadcast %cst_46 : f32 to vector<2x1x8xf32>
    %130 = arith.cmpf oeq, %3, %129 : vector<2x1x8xf32>
    %131 = arith.extui %130 : vector<2x1x8xi1> to vector<2x1x8xi32>
    %132 = arith.sitofp %131 : vector<2x1x8xi32> to vector<2x1x8xf32>
    %133 = vector.shape_cast %128 : vector<16x32xf32> to vector<2x8x32xf32>
    %134 = arith.truncf %133 : vector<2x8x32xf32> to vector<2x8x32xbf16>
    %135 = arith.truncf %132 : vector<2x1x8xf32> to vector<2x1x8xbf16>
    "tpu.trace_start"() <{level = 10 : i32, message = "bqs,bsh->bqh"}> : () -> ()
    %cst_47 = arith.constant dense<0.000000e+00> : vector<2x1x32xf32>
    %136 = tpu.matmul %135, %134, %cst_47 {dimension_numbers = #tpu.dot_dimension_numbers<[2], [1], [1], [2], [0, 0, 0, 1, 1, 2], [0], [0]>} : vector<2x1x8xbf16>, vector<2x8x32xbf16>, vector<2x1x32xf32> -> vector<2x1x32xf32>
    "tpu.trace_stop"() : () -> ()
    %137 = vector.shape_cast %136 : vector<2x1x32xf32> to vector<2x32xf32>
    %cst_48 = arith.constant dense<0.000000e+00> : vector<2x1xf32>
    %138 = vector.multi_reduction <add>, %132, %cst_48 [2] : vector<2x1x8xf32> to vector<2x1xf32>
    %cst_49 = arith.constant 9.99999971E-10 : f32
    %139 = vector.broadcast %cst_49 : f32 to vector<2x1xf32>
    %140 = arith.maximumf %138, %139 : vector<2x1xf32>
    %141 = vector.broadcast %140 : vector<2x1xf32> to vector<2x32xf32>
    %142 = arith.divf %137, %141 : vector<2x32xf32>
    %143 = arith.truncf %142 : vector<2x32xf32> to vector<2x32xbf16>
    %c0_50 = arith.constant 0 : index
    %c0_51 = arith.constant 0 : index
    %144 = vector.load %arg8[%c0_50, %c0_51] : memref<32x128xbf16, #tpu.memory_space<vmem>>, vector<32x128xbf16>
    %cst_52 = arith.constant dense<0.000000e+00> : vector<2x128xf32>
    %145 = tpu.matmul %143, %144, %cst_52 {dimension_numbers = #tpu.dot_dimension_numbers<[1], [0], [0], [1], [0, 0, 1, 1], [], []>} : vector<2x32xbf16>, vector<32x128xbf16>, vector<2x128xf32> -> vector<2x128xf32>
    %c0_53 = arith.constant 0 : index
    %c0_54 = arith.constant 0 : index
    %146 = vector.load %arg9[%c0_53, %c0_54] : memref<1x128xf32, #tpu.memory_space<vmem>>, vector<1x128xf32>
    %147 = vector.broadcast %146 : vector<1x128xf32> to vector<2x128xf32>
    %148 = arith.addf %145, %147 : vector<2x128xf32>
    %c0_55 = arith.constant 0 : index
    %c0_56 = arith.constant 0 : index
    %149 = vector.load %arg10[%c0_55, %c0_56] : memref<2x128xf32, #tpu.memory_space<vmem>>, vector<2x128xf32>
    tpu.vector_store %arg10[%c0_55, %c0_56], %148 {strides = array<i32>} : memref<2x128xf32, #tpu.memory_space<vmem>>, vector<2x128xf32>,
    return
  }
  func.func @transform_0(%arg0: i32) -> (i32, i32, i32) {
    %c0_i32 = arith.constant 0 : i32
    %c0_i32_0 = arith.constant 0 : i32
    %c0_i32_1 = arith.constant 0 : i32
    return %arg0, %c0_i32, %c0_i32_0 : i32, i32, i32
  }
  func.func @transform_1(%arg0: i32) -> (i32, i32, i32) {
    %c0_i32 = arith.constant 0 : i32
    %c0_i32_0 = arith.constant 0 : i32
    %c0_i32_1 = arith.constant 0 : i32
    return %arg0, %c0_i32, %c0_i32_0 : i32, i32, i32
  }
  func.func @transform_2(%arg0: i32) -> (i32, i32, i32) {
    %c0_i32 = arith.constant 0 : i32
    %c0_i32_0 = arith.constant 0 : i32
    %c0_i32_1 = arith.constant 0 : i32
    %c0_i32_2 = arith.constant 0 : i32
    return %c0_i32, %c0_i32_0, %c0_i32_1 : i32, i32, i32
  }
  func.func @transform_3(%arg0: i32) -> (i32, i32) {
    %c0_i32 = arith.constant 0 : i32
    %c0_i32_0 = arith.constant 0 : i32
    %c0_i32_1 = arith.constant 0 : i32
    return %c0_i32, %c0_i32_0 : i32, i32
  }
  func.func @transform_4(%arg0: i32) -> (i32, i32) {
    %c0_i32 = arith.constant 0 : i32
    %c0_i32_0 = arith.constant 0 : i32
    %c0_i32_1 = arith.constant 0 : i32
    return %c0_i32, %c0_i32_0 : i32, i32
  }
  func.func @transform_5(%arg0: i32) -> (i32, i32) {
    %c0_i32 = arith.constant 0 : i32
    %c0_i32_0 = arith.constant 0 : i32
    %c0_i32_1 = arith.constant 0 : i32
    return %c0_i32, %c0_i32_0 : i32, i32
  }
  func.func @transform_6(%arg0: i32) -> (i32, i32) {
    %c0_i32 = arith.constant 0 : i32
    %c0_i32_0 = arith.constant 0 : i32
    %c0_i32_1 = arith.constant 0 : i32
    return %c0_i32, %c0_i32_0 : i32, i32
  }
  func.func @transform_7(%arg0: i32) -> (i32, i32) {
    %c0_i32 = arith.constant 0 : i32
    %c0_i32_0 = arith.constant 0 : i32
    %c0_i32_1 = arith.constant 0 : i32
    return %c0_i32, %c0_i32_0 : i32, i32
  }
  func.func @transform_8(%arg0: i32) -> (i32, i32) {
    %c0_i32 = arith.constant 0 : i32
    %c0_i32_0 = arith.constant 0 : i32
    %c0_i32_1 = arith.constant 0 : i32
    return %c0_i32, %c0_i32_0 : i32, i32
  }
  func.func @transform_9(%arg0: i32) -> (i32, i32) {
    %c0_i32 = arith.constant 0 : i32
    %c0_i32_0 = arith.constant 0 : i32
    return %arg0, %c0_i32 : i32, i32
  }
}

</mosaic_0001>

<bundles_post_ra>
// kernel: tpu_custom_call.1
= control target key start
LH: loop header
LB: loop body
LE: loop exit
PB: predicated region body
PF: predicated region fallthrough
CT: control target
= control target key end

     0   :  { %14 = vsyncpa [#allocation3], 0  ;;  %s1566_s0 = inlined_call_operand.vmem [shape: f32[2,8,32], index: 0, kind: input, shape index: {}]   ;;  %s1567_s1 = inlined_call_operand.hbm [shape: f32[2,1,8], index: 1, kind: input, shape index: {}]   ;;  %s1568_s2 = inlined_call_operand.hbm [shape: bf16[4,32,32], index: 2, kind: input, shape index: {}]   ;;  %s1569_s3 = inlined_call_operand.vmem [shape: f32[9,32], index: 3, kind: input, shape index: {}]   ;;  %s1570_s4 = inlined_call_operand.vmem [shape: bf16[32,64], index: 4, kind: input, shape index: {}]   ;;  %s1571_s5 = inlined_call_operand.vmem [shape: f32[1,64], index: 5, kind: input, shape index: {}]   ;;  %s1572_s6 = inlined_call_operand.vmem [shape: bf16[64,32], index: 6, kind: input, shape index: {}]   ;;  %s1573_s7 = inlined_call_operand.hbm [shape: bf16[32,128], index: 7, kind: input, shape index: {}]   ;;  %s1574_s8 = inlined_call_operand.vmem [shape: f32[1,128], index: 8, kind: input, shape index: {}]   ;;  %s1575_s9 = inlined_call_operand.hbm [shape: f32[2,128], index: 9, kind: output, shape index: {}]  }
   0x1   :  { %15 = vsyncpa [#allocation6], 0 }
   0x2   :  { %16 = vsyncpa [#allocation4], 0  ;;  %s1335_s30 = smov [#allocation5]  }
   0x3   :  { %s36_s10 = sshll.u32 %s1335_s30, 4  ;;  %s37_s10 = int_to_ptr.vmem [resolvable:$true] %s36_s10 }
   0x4   :  { %s1257_s11 = scalar_lea.vmem %s37_s10, 1024  ;;  %p1262_p1 = scmp.lt.s32.totalorder %s37_s10, %s37_s10 }
   0x5   :  { %p1258_p0 = scmp.ne.s32.totalorder %s37_s10, %s1257_s11  ;;  %p1263_p2 = scmp.lt.s32.totalorder %s1257_s11, %s1257_s11 }
   0x7   :  { %p1264_p3 = por %p1263_p2, %p1262_p1 }
   0x9   :  { %p1265_p4 = pnand %p1264_p3, %p1258_p0 }
   0xb   :  { %1268 = shalt.err (!%p1265_p4)
}
   0xc   :  { %s1336_s12 = smov 64   ;;  %s1337_s13 = smov 4  }
   0xd   :  { %42 = dma.hbm_to_vmem [thread:$0]  %s1568_s2, 1024, %s37_s10, [#allocation6], %s1336_s12, %s1336_s12, %s1337_s13  }
   0xe   :  { %s1338_s16 = smov [#allocation2]  }
   0xf   :  { %s24_s17 = sshll.u32 %s1338_s16, 4  ;;  %s25_s17 = int_to_ptr.vmem [resolvable:$true] %s24_s17 }
  0x10   :  { %s1277_s18 = scalar_lea.vmem %s25_s17, 32  ;;  %p1282_p6 = scmp.lt.s32.totalorder %s25_s17, %s25_s17 }
  0x11   :  { %p1278_p5 = scmp.ne.s32.totalorder %s25_s17, %s1277_s18  ;;  %p1283_p7 = scmp.lt.s32.totalorder %s1277_s18, %s1277_s18 }
  0x13   :  { %p1284_p8 = por %p1283_p7, %p1282_p6 }
  0x15   :  { %p1285_p9 = pnand %p1284_p8, %p1278_p5 }
  0x17   :  { %1288 = shalt.err (!%p1285_p9)
}
  0x18   :  { %s1339_s19 = smov 16   ;;  %s1340_s20 = smov 1  }
  0x19   :  { %30 = dma.hbm_to_vmem [thread:$0]  %s1567_s1, 32, %s25_s17, [#allocation3], %s1339_s19, %s1339_s19, %s1340_s20  }
  0x1a   :  { %s1341_s23 = smov [#allocation7]  }
  0x1b   :  { %s56_s24 = sshll.u32 %s1341_s23, 4  ;;  %s57_s24 = int_to_ptr.vmem [resolvable:$true] %s56_s24 }
  0x1c   :  { %s1297_s2 = scalar_lea.vmem %s57_s24, 256  ;;  %p1302_p11 = scmp.lt.s32.totalorder %s57_s24, %s57_s24 }
  0x1d   :  { %p1298_p10 = scmp.ne.s32.totalorder %s57_s24, %s1297_s2  ;;  %p1303_p12 = scmp.lt.s32.totalorder %s1297_s2, %s1297_s2 }
  0x1f   :  { %p1304_p13 = por %p1303_p12, %p1302_p11 }
  0x21   :  { %p1305_p0 = pnand %p1304_p13, %p1298_p10 }
  0x23   :  { %1308 = shalt.err (!%p1305_p0)
}
  0x24   :  { %62 = dma.hbm_to_vmem [thread:$0]  %s1573_s7, 256, %s57_s24, [#allocation6], %s1336_s12, %s1336_s12, %s1337_s13  }
  0x25   :  { %1329 = dma.done.wait [#allocation3], 32  }
  0x26   :  { %1330 = vsyncadd [#allocation3], 4294967264 }
  0x27   :  { %1331 = dma.done.wait [#allocation6], 1280  }
  0x28   :  { %1332 = vsyncadd [#allocation6], 4294966016  ;;  %v1342_v0 = vmov 0.0   ;;  %vm1343_vm0 = vmmov 0   ;;  %v1209_v1 = vld [vmem:[#allocation5 + $0x18] sm:$0xff]   ;;  %v1210_v2 = vld [vmem:[#allocation5 + $0x8] sm:$0xff]   ;;  %v101_v10 = vlaneseq }
  0x29   :  { %1111 = vmatprep.subr.bf16.mxu1 %v1342_v0  ;;  %1103 = vmatprep.subr.bf16.mxu0 %v1342_v0  ;;  %v1211_v3 = vld [vmem:[#allocation5 + $0x10] sm:$0xff]   ;;  %v1212_v4 = vld [vmem:[#allocation5] sm:$0xff]   ;;  %vm117_vm1 = vcmask 261120   ;;  %v1213_v8 = vld [vmem:[#allocation5 + $0x28] sm:$0xff]   ;;  %vm418_vm2 = vcmask 1043456   ;;  %vm390_vm3 = vcmask 64512  }
  0x2a   :  { %1115 = vmatprep.mubr.msk.bf16.mxu1 %vm1343_vm0, %v1342_v0  ;;  %1107 = vmatprep.mubr.msk.bf16.mxu0 %vm1343_vm0, %v1342_v0  ;;  %v1415_v5 = vld [vmem:[%s1566_s0] sm:$0xff]  ;;  %v1420_v6 = vld [vmem:[%s1566_s0 + $0x8] sm:$0xff]  ;;  %v1437_v11 = vshrl.u32 %v101_v10, 7  ;;  %vm733_vm4 = vcmask 523264   ;;  %vm920_vm7 = vcmask 57344   ;;  %vm959_vm8 = vcmask 1041409  }
  0x2b   :  { %1112 = vmatpush3.bf16.msra.mxu1 %v1209_v1  ;;  %1104 = vmatpush3.bf16.msra.mxu0 %v1210_v2  ;;  %v77_v7 = vpack.c.bf16 %v1420_v6, %v1415_v5  ;;  %v1214_v9 = vld [vmem:[#allocation5 + $0x20] sm:$0xff]   ;;  %v1467_v47 = vld [vmem:[#allocation2] sm:$0x1]  ;;  %v1471_v50 = vld [vmem:[#allocation2 + $0x1] sm:$0x1]  ;;  %s1344_s23 = smov [#allocation8]  }
  0x2c   :  { %1113 = vmatprep.subr.bf16.mxu1 %v1342_v0  ;;  %1105 = vmatprep.subr.bf16.mxu0 %v1342_v0  ;;  %v164_v12 = vsub.s32 1, %v1437_v11  ;;  %v1443_v13 = vld [vmem:[%s1569_s3] sm:$0xff]  ;;  %v1447_v15 = vsub.s32 0, %v1437_v11  ;;  %v221_v35 = vsub.s32 2, %v1437_v11  ;;  %vm818_vm5 = vcmp.eq.f32.partialorder %v1467_v47, 0.0  ;;  %s1024_s24 = sshll.u32 %s1344_s23, 4  ;;  %s1025_s24 = int_to_ptr.vmem [resolvable:$true] %s1024_s24 }
  0x2d   :  { %vm819_vm6 = vcmp.eq.f32.partialorder %v1471_v50, 0.0  ;;  %s1309_s2 = scalar_lea.vmem %s1025_s24, 32  ;;  %p1314_p2 = scmp.lt.s32.totalorder %s1025_s24, %s1025_s24 }
  0x2e   :  { %v165_v14 = vrot.slane %v1443_v13, %v164_v12  ;;  %v104_v18 = vrot.slane %v1443_v13, %v1447_v15  ;;  %v222_v36 = vrot.slane %v1443_v13, %v221_v35  ;;  %v381_v48 = vrot.slane %v1467_v47, %v1447_v15  ;;  %p1310_p1 = scmp.ne.s32.totalorder %s1025_s24, %s1309_s2  ;;  %p1315_p3 = scmp.lt.s32.totalorder %s1309_s2, %s1309_s2 }
  0x2f   :  { %1114 = vmatpush3.bf16.msra.mxu1 %v1211_v3  ;;  %1106 = vmatpush3.bf16.msra.mxu0 %v1212_v4  ;;  %v385_v54 = vrot.slane %v1471_v50, %v1447_v15  ;;  %v808_v47 = vsub.s32 7, %v1437_v11 }
  0x30   :  { %1127 = vmatprep.subr.bf16.mxu1 %v1342_v0  ;;  %1119 = vmatprep.subr.bf16.mxu0 %v1342_v0  ;;  %p1316_p4 = por %p1315_p3, %p1314_p2 }
  0x31   :  { %v809_v50 = vrot.slane %v1443_v13, %v808_v47 }
  0x32   :  { %1116 = vmatmul.mubr.msk.bf16.vlgmr.msra.gmra.mxu1 %vm117_vm1, %v77_v7  ;;  %1108 = vmatmul.mubr.msk.bf16.vlgmr.msra.gmra.mxu0 %vm117_vm1, %v77_v7  ;;  %p1317_p5 = pnand %p1316_p4, %p1310_p1 }
  0x33   :  { %1129 = vmatprep.mubr.msk.bf16.mxu1 %vm1343_vm0, %v1342_v0  ;;  %1120 = vmatpush3.bf16.msra.mxu0 %v1213_v8 }
  0x34   :  { %1123 = vmatprep.mubr.msk.bf16.mxu0 %vm1343_vm0, %v1342_v0  ;;  %1121 = vmatprep.subr.bf16.mxu0 %v1342_v0 }
  0x37   :  { %1122 = vmatpush3.bf16.msra.mxu0 %v1214_v9 }
  0x38   :  { %1133 = vmatprep.subr.bf16.mxu0 %v1342_v0 }
  0x3a   :  { %1124 = vmatmul.mubr.msk.bf16.vlgmr.msra.gmra.mxu0 %vm117_vm1, %v77_v7 }
  0x3b   :  { %1135 = vmatprep.mubr.msk.bf16.mxu0 %vm1343_vm0, %v1342_v0 }
  0xf2   :  { %v212_v16 = vpop.f32.mrf.mxu1  ;;  %v155_v19 = vpop.f32.mrf.mxu0 }
  0xf3   :  { %v213_v17 = vadd.f32 %v212_v16, %v165_v14  ;;  %v156_v25 = vadd.f32 %v155_v19, %v104_v18 }
  0xf4   :  { %v1117_v20 = vpop.f32.mrf.mxu1  ;;  %v1109_v22 = vpop.f32.mrf.mxu0 }
  0xf5   :  { %v278_v21 = vpack.c.bf16 %v213_v17, %v213_v17  ;;  %v276_v31 = vpack.c.bf16 %v156_v25, %v156_v25  ;;  %v1215_v25 = vld [vmem:[#allocation5 + $0x38] sm:$0xff]  }
  0xf6   :  { %v215_v23 = vpop.f32.mrf.mxu1  ;;  %v158_v27 = vpop.f32.mrf.mxu0 }
  0xf7   :  { %v286_v24 = vsel %vm117_vm1, %v278_v21, 0  ;;  %v216_v26 = vadd.f32 %v215_v23, %v165_v14  ;;  %v159_v33 = vadd.f32 %v158_v27, %v104_v18 }
  0xf8   :  { %v1118_v28 = vpop.f32.mrf.mxu1  ;;  %1128 = vmatpush3.bf16.xpose.msra.mxu1 %v286_v24  ;;  %v1110_v30 = vpop.f32.mrf.mxu0 }
  0xf9   :  { %v279_v29 = vpack.c.bf16 %v216_v26, %v216_v26  ;;  %1139 = vmatprep.subr.bf16.mxu1 %v1342_v0  ;;  %v277_v34 = vpack.c.bf16 %v159_v33, %v159_v33  ;;  %v1216_v26 = vld [vmem:[#allocation5 + $0x30] sm:$0xff]  }
  0xfa   :  { %v269_v37 = vpop.f32.mrf.mxu0 }
  0xfb   :  { %v332_v32 = vsel %vm117_vm1, %v279_v29, 0  ;;  %v270_v38 = vadd.f32 %v269_v37, %v222_v36 }
  0xfc   :  { %1134 = vmatpush3.bf16.xpose.msra.mxu0 %v332_v32  ;;  %v1125_v39 = vpop.f32.mrf.mxu0 }
  0xfd   :  { %1145 = vmatprep.subr.bf16.mxu0 %v1342_v0  ;;  %v280_v40 = vpack.c.bf16 %v270_v38, %v270_v38 }
  0xfe   :  { %v272_v41 = vpop.f32.mrf.mxu0 }
  0xff   :  { %1130 = vmatmul.mubr.msk.bf16.vlgmr.msra.gmra.mxu1 %vm117_vm1, %v276_v31  ;;  %v420_v42 = vsel %vm418_vm2, %v280_v40, 0  ;;  %v273_v43 = vadd.f32 %v272_v41, %v222_v36  ;;  %v511_v36 = vsub.s32 3, %v1437_v11 }
 0x100   :  { %1141 = vmatprep.mubr.msk.bf16.mxu1 %vm1343_vm0, %v1342_v0  ;;  %v1126_v44 = vpop.f32.mrf.mxu0  ;;  %1140 = vmatpush3.bf16.msra.mxu1 %v420_v42 }
 0x101   :  { %v281_v45 = vpack.c.bf16 %v273_v43, %v273_v43  ;;  %1151 = vmatprep.subr.bf16.mxu1 %v1342_v0  ;;  %v512_v37 = vrot.slane %v1443_v13, %v511_v36 }
 0x103   :  { %1136 = vmatmul.mubr.msk.bf16.vlgmr.msra.gmra.mxu0 %vm117_vm1, %v277_v34  ;;  %v466_v46 = vsel %vm418_vm2, %v281_v45, 0 }
 0x104   :  { %1147 = vmatprep.mubr.msk.bf16.mxu0 %vm1343_vm0, %v1342_v0  ;;  %1146 = vmatpush3.bf16.msra.mxu0 %v466_v46 }
 0x105   :  { %1159 = vmatprep.subr.bf16.mxu0 %v1342_v0 }
 0x1bf   :  { %v322_v49 = vpop.f32.mrf.mxu1 }
 0x1c0   :  { %v374_v51 = vmul.f32 0.17677669, %v322_v49 }
 0x1c1   :  { %v1131_v52 = vpop.f32.mrf.mxu1 }
 0x1c2   :  { %v388_v53 = vadd.f32 %v381_v48, %v374_v51 }
 0x1c3   :  { %v325_v55 = vpop.f32.mrf.mxu1  ;;  %v368_v56 = vpop.f32.mrf.mxu0 }
 0x1c4   :  { %v375_v57 = vmul.f32 0.17677669, %v368_v56  ;;  %v391_v58 = vsel %vm390_vm3, %v388_v53, -inf }
 0x1c5   :  { %392 = vmax.xlane.f32.xlu0 %v391_v58  ;;  %v1132_v59 = vpop.f32.mrf.mxu1  ;;  %v1137_v60 = vpop.f32.mrf.mxu0 }
 0x1c6   :  { %v389_v61 = vadd.f32 %v385_v54, %v375_v57  ;;  %v1218_v59 = vld [vmem:[%s1570_s4] sm:$0xff]  }
 0x1c7   :  { %v371_v62 = vpop.f32.mrf.mxu0 }
 0x1c8   :  { %v394_v63 = vsel %vm390_vm3, %v389_v61, -inf }
 0x1c9   :  { %395 = vmax.xlane.f32.xlu0 %v394_v63  ;;  %v1138_v1 = vpop.f32.mrf.mxu0 }
 0x24e   :  { %v393_v2 = vpop.xlane.xlu0 %392 }
 0x24f   :  { %v397_v3 = vsub.f32 %v388_v53, %v393_v2 }
 0x251   :  { %v399_v4 = vmul.f32 1.442695, %v397_v3  ;;  %v600_v3 = vsub.s32 4, %v1437_v11 }
 0x252   :  { %v396_v7 = vpop.xlane.xlu0 %395 }
 0x253   :  { %1225 = vpow2.f32 %v399_v4  ;;  %v398_v8 = vsub.f32 %v389_v61, %v396_v7 }
 0x255   :  { %v401_v9 = vmul.f32 1.442695, %v398_v8  ;;  %v601_v8 = vrot.slane %v1443_v13, %v600_v3 }
 0x257   :  { %1227 = vpow2.f32 %v401_v9  ;;  %v606_v9 = vsub.s32 5, %v1437_v11 }
 0x260   :  { %v1226_v10 = vpop.eup %1225 }
 0x261   :  { %v403_v12 = vsel %vm390_vm3, %v1226_v10, 0.0 }
 0x262   :  { %404 = vadd.xlane.f32.xlu1 %v403_v12 }
 0x264   :  { %v1228_v14 = vpop.eup %1227 }
 0x265   :  { %v406_v16 = vsel %vm390_vm3, %v1228_v14, 0.0 }
 0x266   :  { %407 = vadd.xlane.f32.xlu1 %v406_v16  ;;  %v607_v16 = vrot.slane %v1443_v13, %v606_v9 }
 0x2eb   :  { %v405_v17 = vpop.xlane.xlu1 %404 }
 0x2ec   :  { %1229 = vrcp.f32 %v405_v17 }
 0x2ef   :  { %v408_v18 = vpop.xlane.xlu1 %407 }
 0x2f0   :  { %1231 = vrcp.f32 %v408_v18 }
 0x2f9   :  { %v1230_v19 = vpop.eup %1229 }
 0x2fa   :  { %v411_v20 = vmul.f32 %v1230_v19, %v1226_v10 }
 0x2fc   :  { %v413_v21 = vpack.c.bf16 %v411_v20, %v411_v20 }
 0x2fd   :  { %v1232_v22 = vpop.eup %1231 }
 0x2fe   :  { %1142 = vmatmul.mubr.msk.bf16.vlgmr.msra.gmra.mxu1 %vm390_vm3, %v413_v21  ;;  %v412_v23 = vmul.f32 %v1232_v22, %v1228_v14  ;;  %v1219_v21 = vld [vmem:[%s1572_s6 + $0x18] sm:$0xff]   ;;  %v1220_v22 = vld [vmem:[%s1572_s6 + $0x10] sm:$0xff]  }
 0x2ff   :  { %1155 = vmatprep.mubr.msk.bf16.mxu1 %vm1343_vm0, %v1342_v0  ;;  %1152 = vmatpush3.bf16.msra.mxu1 %v1215_v25  ;;  %v1050_v25 = vld [vmem:[%s1571_s5] ss:$0 sm:$0xff] }
 0x300   :  { %v414_v24 = vpack.c.bf16 %v412_v23, %v412_v23  ;;  %1153 = vmatprep.subr.bf16.mxu1 %v1342_v0  ;;  %v1221_v23 = vld [vmem:[%s1572_s6 + $0x8] sm:$0xff]  }
 0x302   :  { %1148 = vmatmul.mubr.msk.bf16.vlgmr.msra.gmra.mxu0 %vm390_vm3, %v414_v24  ;;  %v1222_v24 = vld [vmem:[%s1572_s6] sm:$0xff]  }
 0x303   :  { %1163 = vmatprep.mubr.msk.bf16.mxu0 %vm1343_vm0, %v1342_v0  ;;  %1154 = vmatpush3.bf16.msra.mxu1 %v1216_v26 }
 0x304   :  { %1167 = vmatprep.subr.bf16.mxu1 %v1342_v0 }
 0x3be   :  { %v456_v27 = vpop.f32.mrf.mxu1 }
 0x3c0   :  { %v1143_v28 = vpop.f32.mrf.mxu1 }
 0x3c2   :  { %v459_v29 = vpop.f32.mrf.mxu1  ;;  %v502_v30 = vpop.f32.mrf.mxu0 }
 0x3c3   :  { %v508_v31 = vpack.c.bf16 %v502_v30, %v456_v27 }
 0x3c4   :  { %v1144_v32 = vpop.f32.mrf.mxu1  ;;  %v1149_v33 = vpop.f32.mrf.mxu0 }
 0x3c5   :  { %1156 = vmatmul.mubr.msk.bf16.vlgmr.msra.gmra.mxu1 %vm117_vm1, %v508_v31 }
 0x3c6   :  { %v505_v34 = vpop.f32.mrf.mxu0  ;;  %1175 = vmatprep.mubr.msk.bf16.mxu1 %vm1343_vm0, %v1342_v0  ;;  %1168 = vmatpush3.bf16.msra.mxu1 %v1219_v21 }
 0x3c7   :  { %1169 = vmatprep.subr.bf16.mxu1 %v1342_v0 }
 0x3c8   :  { %v1150_v35 = vpop.f32.mrf.mxu0 }
 0x3ca   :  { %1170 = vmatpush3.bf16.msra.mxu1 %v1220_v22 }
 0x3cb   :  { %1171 = vmatprep.subr.bf16.mxu1 %v1342_v0 }
 0x3ce   :  { %1172 = vmatpush3.bf16.msra.mxu1 %v1221_v23 }
 0x3cf   :  { %1173 = vmatprep.subr.bf16.mxu1 %v1342_v0 }
 0x3d2   :  { %1174 = vmatpush3.bf16.msra.mxu1 %v1222_v24 }
 0x3d3   :  { %1191 = vmatprep.subr.bf16.mxu1 %v1342_v0 }
 0x485   :  { %v562_v38 = vpop.f32.mrf.mxu1 }
 0x486   :  { %v563_v39 = vadd.f32 %v562_v38, %v512_v37 }
 0x487   :  { %v1157_v40 = vpop.f32.mrf.mxu1 }
 0x488   :  { %v569_v41 = vadd.f32 %v563_v39, %v1415_v5 }
 0x489   :  { %v565_v42 = vpop.f32.mrf.mxu1 }
 0x48a   :  { %v566_v43 = vadd.f32 %v565_v42, %v512_v37  ;;  %v571_v44 = vsel %vm117_vm1, %v569_v41, 0.0 }
 0x48b   :  { %572 = vadd.xlane.f32.xlu0 %v571_v44  ;;  %v1158_v45 = vpop.f32.mrf.mxu1 }
 0x48c   :  { %v570_v46 = vadd.f32 %v566_v43, %v1420_v6  ;;  %v1217_v6 = vld [vmem:[%s1570_s4 + $0x8] sm:$0xff]  }
 0x48d   :  { %1160 = vmatpush3.bf16.msra.mxu0 %v1217_v6 }
 0x48e   :  { %v574_v48 = vsel %vm117_vm1, %v570_v46, 0.0  ;;  %1161 = vmatprep.subr.bf16.mxu0 %v1342_v0 }
 0x48f   :  { %575 = vadd.xlane.f32.xlu1 %v574_v48 }
 0x491   :  { %1162 = vmatpush3.bf16.msra.mxu0 %v1218_v59 }
 0x492   :  { %1179 = vmatprep.subr.bf16.mxu0 %v1342_v0 }
 0x514   :  { %v573_v49 = vpop.xlane.xlu0 %572 }
 0x515   :  { %v578_v51 = vmul.f32 0.03125, %v573_v49 }
 0x517   :  { %v580_v52 = vsub.f32 %v569_v41, %v578_v51 }
 0x518   :  { %v576_v53 = vpop.xlane.xlu1 %575 }
 0x519   :  { %v579_v54 = vmul.f32 0.03125, %v576_v53  ;;  %v582_v55 = vmul.f32 %v580_v52, %v580_v52  ;;  %v707_v53 = vsub.s32 6, %v1437_v11 }
 0x51b   :  { %v581_v56 = vsub.f32 %v570_v46, %v579_v54  ;;  %v584_v5 = vsel %vm117_vm1, %v582_v55, 0.0  ;;  %v708_v54 = vrot.slane %v1443_v13, %v707_v53 }
 0x51c   :  { %585 = vadd.xlane.f32.xlu0 %v584_v5 }
 0x51d   :  { %v583_v57 = vmul.f32 %v581_v56, %v581_v56 }
 0x51f   :  { %v587_v58 = vsel %vm117_vm1, %v583_v57, 0.0 }
 0x520   :  { %588 = vadd.xlane.f32.xlu1 %v587_v58 }
 0x5a5   :  { %v586_v60 = vpop.xlane.xlu0 %585 }
 0x5a6   :  { %v590_v61 = vmul.f32 0.03125, %v586_v60 }
 0x5a8   :  { %v592_v62 = vadd.f32 1e-12, %v590_v61 }
 0x5a9   :  { %v589_v63 = vpop.xlane.xlu1 %588 }
 0x5aa   :  { %1233 = vrsqrt.f32 %v592_v62  ;;  %v591_v1 = vmul.f32 0.03125, %v589_v63 }
 0x5ac   :  { %v593_v2 = vadd.f32 1e-12, %v591_v1 }
 0x5ae   :  { %1235 = vrsqrt.f32 %v593_v2 }
 0x5b7   :  { %v1234_v4 = vpop.eup %1233 }
 0x5b8   :  { %v596_v7 = vmul.f32 %v1234_v4, %v580_v52 }
 0x5ba   :  { %v602_v14 = vmul.f32 %v601_v8, %v596_v7 }
 0x5bb   :  { %v1236_v10 = vpop.eup %1235 }
 0x5bc   :  { %v597_v12 = vmul.f32 %v1236_v10, %v581_v56  ;;  %v608_v18 = vadd.f32 %v607_v16, %v602_v14  ;;  %v1060_v14 = vsel %vm818_vm5, 1.0, %v1342_v0 }
 0x5be   :  { %v603_v17 = vmul.f32 %v601_v8, %v597_v12 }
 0x5c0   :  { %v609_v19 = vadd.f32 %v607_v16, %v603_v17  ;;  %v1061_v16 = vsel %vm819_vm6, 1.0, %v1342_v0  ;;  %v921_v17 = vsel %vm920_vm7, %v1060_v14, 0.0 }
 0x5c2   :  { %v610_v20 = vpack.c.bf16 %v609_v19, %v608_v18 }
 0x5c4   :  { %1164 = vmatmul.mubr.msk.bf16.vlgmr.msra.gmra.mxu0 %vm117_vm1, %v610_v20 }
 0x5c5   :  { %1181 = vmatprep.mubr.msk.bf16.mxu0 %vm1343_vm0, %v1342_v0 }
 0x684   :  { %v671_v26 = vpop.f32.mrf.mxu0 }
 0x685   :  { %v672_v27 = vadd.f32 %v1050_v25, %v671_v26 }
 0x686   :  { %v1165_v28 = vpop.f32.mrf.mxu0 }
 0x687   :  { %v678_v29 = vmul.f32 %v672_v27, %v672_v27 }
 0x688   :  { %v674_v30 = vpop.f32.mrf.mxu0 }
 0x689   :  { %v680_v31 = vmul.f32 %v678_v29, %v672_v27  ;;  %v675_v32 = vadd.f32 %v1050_v25, %v674_v30 }
 0x68a   :  { %v1166_v33 = vpop.f32.mrf.mxu0 }
 0x68b   :  { %v682_v34 = vmul.f32 0.044715, %v680_v31  ;;  %v679_v35 = vmul.f32 %v675_v32, %v675_v32 }
 0x68d   :  { %v684_v36 = vadd.f32 %v682_v34, %v672_v27  ;;  %v681_v37 = vmul.f32 %v679_v35, %v675_v32  ;;  %v826_v34 = vpack.c.bf16 %v1060_v14, %v1060_v14 }
 0x68f   :  { %v686_v38 = vmul.f32 0.7978846, %v684_v36  ;;  %v683_v39 = vmul.f32 0.044715, %v681_v37  ;;  %v827_v37 = vpack.c.bf16 %v1061_v16, %v1061_v16 }
 0x691   :  { %1237 = vtanh.f32 %v686_v38  ;;  %v685_v40 = vadd.f32 %v683_v39, %v675_v32  ;;  %v1223_v38 = vld [vmem:[#allocation7 + $0x8] sm:$0xff]   ;;  %v1224_v39 = vld [vmem:[#allocation7] sm:$0xff]  }
 0x693   :  { %v687_v41 = vmul.f32 0.7978846, %v685_v40 }
 0x695   :  { %1239 = vtanh.f32 %v687_v41 }
 0x69e   :  { %v1238_v42 = vpop.eup %1237 }
 0x69f   :  { %v690_v43 = vadd.f32 1.0, %v1238_v42 }
 0x6a1   :  { %v692_v45 = vmul.f32 0.5, %v690_v43 }
 0x6a2   :  { %v1240_v44 = vpop.eup %1239 }
 0x6a3   :  { %v691_v46 = vadd.f32 1.0, %v1240_v44  ;;  %v694_v49 = vmul.f32 %v692_v45, %v672_v27  ;;  %v1059_v27 = vld [vmem:[%s1569_s3 + $0x8] ss:$0 sm:$0xff] }
 0x6a5   :  { %v693_v48 = vmul.f32 0.5, %v691_v46 }
 0x6a7   :  { %v695_v51 = vmul.f32 %v693_v48, %v675_v32 }
 0x6a9   :  { %v696_v52 = vpack.c.bf16 %v695_v51, %v694_v49 }
 0x6ab   :  { %1176 = vmatmul.mubr.msk.bf16.vlgmr.msra.gmra.mxu1 %vm733_vm4, %v696_v52 }
 0x6ac   :  { %1195 = vmatprep.mubr.msk.bf16.mxu1 %vm1343_vm0, %v1342_v0  ;;  %1192 = vmatpush3.bf16.msra.mxu1 %v1223_v38 }
 0x6ad   :  { %1193 = vmatprep.subr.bf16.mxu1 %v1342_v0 }
 0x6b0   :  { %1194 = vmatpush3.bf16.msra.mxu1 %v1224_v39 }
 0x76b   :  { %v771_v55 = vpop.f32.mrf.mxu1 }
 0x76c   :  { %v772_v56 = vadd.f32 %v771_v55, %v708_v54 }
 0x76d   :  { %v1177_v5 = vpop.f32.mrf.mxu1 }
 0x76e   :  { %v778_v57 = vadd.f32 %v772_v56, %v608_v18  ;;  %v924_v18 = vsel %vm920_vm7, %v1061_v16, 0.0 }
 0x76f   :  { %v774_v58 = vpop.f32.mrf.mxu1 }
 0x770   :  { %v775_v6 = vadd.f32 %v774_v58, %v708_v54  ;;  %v780_v59 = vsel %vm117_vm1, %v778_v57, 0.0 }
 0x771   :  { %781 = vadd.xlane.f32.xlu0 %v780_v59  ;;  %v1178_v60 = vpop.f32.mrf.mxu1 }
 0x772   :  { %v779_v61 = vadd.f32 %v775_v6, %v609_v19 }
 0x774   :  { %v783_v62 = vsel %vm117_vm1, %v779_v61, 0.0 }
 0x775   :  { %784 = vadd.xlane.f32.xlu1 %v783_v62 }
 0x7fa   :  { %v782_v63 = vpop.xlane.xlu0 %781 }
 0x7fb   :  { %v786_v1 = vmul.f32 0.03125, %v782_v63  ;;  %v1064_v63 = vld [vmem:[%s1574_s8] ss:$0 sm:$0xff] }
 0x7fd   :  { %v788_v2 = vsub.f32 %v778_v57, %v786_v1 }
 0x7fe   :  { %v785_v3 = vpop.xlane.xlu1 %784 }
 0x7ff   :  { %v787_v4 = vmul.f32 0.03125, %v785_v3  ;;  %v790_v7 = vmul.f32 %v788_v2, %v788_v2 }
 0x801   :  { %v789_v8 = vsub.f32 %v779_v61, %v787_v4  ;;  %v792_v9 = vsel %vm117_vm1, %v790_v7, 0.0 }
 0x802   :  { %793 = vadd.xlane.f32.xlu0 %v792_v9 }
 0x803   :  { %v791_v10 = vmul.f32 %v789_v8, %v789_v8 }
 0x805   :  { %v795_v12 = vsel %vm117_vm1, %v791_v10, 0.0 }
 0x806   :  { %796 = vadd.xlane.f32.xlu1 %v795_v12  ;;  %925 = vadd.xlane.f32.xlu0 %v924_v18 }
 0x80a   :  { %922 = vadd.xlane.f32.xlu1 %v921_v17 }
 0x88b   :  { %v794_v19 = vpop.xlane.xlu0 %793 }
 0x88c   :  { %v798_v20 = vmul.f32 0.03125, %v794_v19 }
 0x88e   :  { %v800_v21 = vadd.f32 1e-12, %v798_v20 }
 0x88f   :  { %v797_v22 = vpop.xlane.xlu1 %796  ;;  %v926_v41 = vpop.xlane.xlu0 %925 }
 0x890   :  { %1241 = vrsqrt.f32 %v800_v21  ;;  %v799_v23 = vmul.f32 0.03125, %v797_v22  ;;  %v928_v43 = vmax.f32 %v926_v41, 1e-09 }
 0x892   :  { %v801_v24 = vadd.f32 1e-12, %v799_v23  ;;  %v936_v45 = vrot.slane %v928_v43, %v1447_v15 }
 0x893   :  { %v923_v40 = vpop.xlane.xlu1 %922 }
 0x894   :  { %1243 = vrsqrt.f32 %v801_v24  ;;  %v927_v42 = vmax.f32 %v923_v40, 1e-09 }
 0x896   :  { %v932_v44 = vrot.slane %v927_v42, %v1447_v15 }
 0x898   :  { %1245 = vrcp.f32 %v932_v44 }
 0x899   :  { %1247 = vrcp.f32 %v936_v45 }
 0x89d   :  { %v1242_v25 = vpop.eup %1241 }
 0x89e   :  { %v804_v26 = vmul.f32 %v1242_v25, %v788_v2 }
 0x8a0   :  { %v810_v28 = vmul.f32 %v809_v50, %v804_v26 }
 0x8a1   :  { %v1244_v29 = vpop.eup %1243 }
 0x8a2   :  { %v816_v30 = vadd.f32 %v1059_v27, %v810_v28  ;;  %v805_v31 = vmul.f32 %v1244_v29, %v789_v8 }
 0x8a4   :  { %v824_v32 = vpack.c.bf16 %v816_v30, %v816_v30  ;;  %v811_v33 = vmul.f32 %v809_v50, %v805_v31 }
 0x8a5   :  { %v1246_v49 = vpop.eup %1245 }
 0x8a6   :  { %v832_v35 = vsel %vm418_vm2, %v824_v32, 0  ;;  %v817_v36 = vadd.f32 %v1059_v27, %v811_v33  ;;  %v1248_v52 = vpop.eup %1247 }
 0x8a7   :  { %1180 = vmatpush3.bf16.msra.mxu0 %v832_v35 }
 0x8a8   :  { %1185 = vmatprep.subr.bf16.mxu0 %v1342_v0  ;;  %v825_v11 = vpack.c.bf16 %v817_v36, %v817_v36 }
 0x8aa   :  { %1182 = vmatmul.mubr.msk.bf16.vlgmr.msra.gmra.mxu0 %vm390_vm3, %v826_v34  ;;  %v878_v13 = vsel %vm418_vm2, %v825_v11, 0 }
 0x8ab   :  { %1186 = vmatpush3.bf16.msra.mxu0 %v878_v13  ;;  %1187 = vmatprep.mubr.msk.bf16.mxu0 %vm1343_vm0, %v1342_v0 }
 0x8b2   :  { %1188 = vmatmul.mubr.msk.bf16.vlgmr.msra.gmra.mxu0 %vm390_vm3, %v827_v37 }
 0x96a   :  { %v868_v46 = vpop.f32.mrf.mxu0 }
 0x96b   :  { %v938_v54 = vmul.f32 %v1246_v49, %v868_v46 }
 0x96c   :  { %v1183_v48 = vpop.f32.mrf.mxu0 }
 0x96d   :  { %v941_v5 = vpack.c.bf16 %v938_v54, %v938_v54 }
 0x96e   :  { %v871_v51 = vpop.f32.mrf.mxu0 }
 0x96f   :  { %v956_v60 = vunpack.c.l.b16 %v941_v5 }
 0x970   :  { %v1184_v53 = vpop.f32.mrf.mxu0 }
 0x972   :  { %v914_v0 = vpop.f32.mrf.mxu0 }
 0x973   :  { %v940_v55 = vmul.f32 %v1248_v52, %v914_v0 }
 0x974   :  { %v1189_v56 = vpop.f32.mrf.mxu0 }
 0x975   :  { %v942_v57 = vpack.c.bf16 %v940_v55, %v940_v55 }
 0x976   :  { %v917_v58 = vpop.f32.mrf.mxu0 }
 0x977   :  { %v957_v6 = vunpack.c.l.b16 %v942_v57 }
 0x978   :  { %v1190_v59 = vpop.f32.mrf.mxu0 }
 0x979   :  { %v958_v15 = vrot.slane %v957_v6, 7 }
 0x97b   :  { %v960_v61 = vsel %vm959_vm8, %v958_v15, %v956_v60 }
 0x97c   :  { %v961_v62 = vpack.c.b16 %v960_v61, %v960_v61 }
 0x97e   :  { %1196 = vmatmul.mubr.msk.bf16.vlgmr.msra.gmra.mxu1 %vm117_vm1, %v961_v62 }
 0xa3e   :  { %v1011_v1 = vpop.f32.mrf.mxu1 }
 0xa3f   :  { %v1012_v2 = vadd.f32 %v1064_v63, %v1011_v1 }
 0xa40   :  { %v1197_v3 = vpop.f32.mrf.mxu1 }
 0xa41   :  { %1017 = vst [vmem:[#allocation8] sm:$0x3] %v1012_v2 }
 0xa42   :  { %v1014_v4 = vpop.f32.mrf.mxu1 }
 0xa43   :  { %1320 = shalt.err (!%p1317_p5)
}
 0xa44   :  { %1027 = dma.vmem_to_hbm [thread:$0]  %s1025_s24, 32, %s1575_s9, [#allocation4]   ;;  %v1198_v7 = vpop.f32.mrf.mxu1 }
 0xa45   :  { %1333 = dma.done.wait [#allocation4], 32  }
 0xa46   :  { %1334 = vsyncadd [#allocation4], 4294967264 }
 0xa47   :  { %1031 = vsyncpa [#allocation3], 1 }
 0xa48   :  { %1032 = vsyncpa [#allocation6], 1 }
 0xa49   :  { %1033 = vsyncpa [#allocation4], 1 }

</bundles_post_ra>
